<compile_context>
chip_gen: v7x
topology: tpu7x:2x2x1
jax: 0.10.0
libtpu: 0.0.40
codegen_flags: <defaults>
</compile_context>

<pallas_src>
import jax
import jax.numpy as jnp
from jax.experimental import pallas as pl
from jax.experimental.pallas import tpu as pltpu


LANE = 128


def _round_up(n, m):
    return (n + m - 1) // m * m


def mlp_kernel(x_ref, w1_ref, b1_ref, w2_ref, b2_ref, o_ref):
    # fc1: bf16 (B, Dp) @ bf16 (Dp, Hp) -> f32 accumulate on the MXU.
    h = jnp.dot(x_ref[...], w1_ref[...], preferred_element_type=jnp.float32)
    # Bias + ReLU epilogue in f32 (padded hidden columns are 0 -> relu(0) = 0).
    h = jnp.maximum(h + b1_ref[...], 0.0)
    # TODO(synk): dropout(p=0.3) omitted — identity in eval/inference mode.
    # fc2: f32 (B, Hp) @ f32 (Hp, Cp) + (1, Cp); padded rows/cols contribute 0.
    out = jnp.dot(h, w2_ref[...], preferred_element_type=jnp.float32) + b2_ref[...]
    o_ref[...] = out.astype(o_ref.dtype)


def cnn_classifier_forward(x, w1, b1, w2, b2):
    """x: (B, D) f32; w1: (D, H); b1: (H,); w2: (H, C); b2: (C,).  Returns (B, C) f32."""
    B, D = x.shape
    H = w1.shape[1]
    C = w2.shape[1]

    Dp = _round_up(D, LANE)   # 1292 -> 1408
    Hp = _round_up(H, LANE)   # 64   -> 128
    Cp = _round_up(C, LANE)   # 2    -> 128

    # Host-side zero padding (zeros contribute nothing to the dots) + bf16 cast
    # of the large operands of the first matmul.
    x_p = jnp.zeros((B, Dp), jnp.bfloat16).at[:, :D].set(x.astype(jnp.bfloat16))
    w1_p = jnp.zeros((Dp, Hp), jnp.bfloat16).at[:D, :H].set(w1.astype(jnp.bfloat16))
    b1_p = jnp.zeros((1, Hp), jnp.float32).at[:, :H].set(b1.reshape(1, H))
    w2_p = jnp.zeros((Hp, Cp), jnp.float32).at[:H, :C].set(w2)
    b2_p = jnp.zeros((1, Cp), jnp.float32).at[:, :C].set(b2.reshape(1, C))

    vmem = pltpu.MemorySpace.VMEM
    bytes_accessed = (
        x_p.size * 2 + w1_p.size * 2          # bf16 operands
        + (b1_p.size + w2_p.size + b2_p.size) * 4
        + B * Cp * 4                           # output
    )
    cost = pl.CostEstimate(
        flops=2 * B * (Dp * Hp + Hp * Cp),
        transcendentals=0,
        bytes_accessed=bytes_accessed,
    )

    out_padded = pl.pallas_call(
        mlp_kernel,
        out_shape=jax.ShapeDtypeStruct((B, Cp), jnp.float32),
        in_specs=[
            pl.BlockSpec((B, Dp), lambda: (0, 0), memory_space=vmem),
            pl.BlockSpec((Dp, Hp), lambda: (0, 0), memory_space=vmem),
            pl.BlockSpec((1, Hp), lambda: (0, 0), memory_space=vmem),
            pl.BlockSpec((Hp, Cp), lambda: (0, 0), memory_space=vmem),
            pl.BlockSpec((1, Cp), lambda: (0, 0), memory_space=vmem),
        ],
        out_specs=pl.BlockSpec((B, Cp), lambda: (0, 0), memory_space=vmem),
        cost_estimate=cost,
    )(x_p, w1_p, b1_p, w2_p, b2_p)

    # Lane-dense padded output -> slice back to the real class count.
    return out_padded[:, :C]


def init_params(key, input_dim, hidden_dim, num_classes=2):
    """Deterministic init mimicking nn.Linear's uniform(-1/sqrt(fan_in), 1/sqrt(fan_in))."""
    k1, k2, k3, k4 = jax.random.split(key, 4)
    bound1 = 1.0 / jnp.sqrt(input_dim)
    bound2 = 1.0 / jnp.sqrt(hidden_dim)
    # Stored as (in, out) — i.e. PyTorch weight transposed.
    w1 = jax.random.uniform(k1, (input_dim, hidden_dim), jnp.float32, -bound1, bound1)
    b1 = jax.random.uniform(k2, (hidden_dim,), jnp.float32, -bound1, bound1)
    w2 = jax.random.uniform(k3, (hidden_dim, num_classes), jnp.float32, -bound2, bound2)
    b2 = jax.random.uniform(k4, (num_classes,), jnp.float32, -bound2, bound2)
    return w1, b1, w2, b2


if __name__ == "__main__":
    # Small shapes consistent with the module's forward: (batch, input_dim) -> (batch, 2)
    batch = 8
    input_dim = 1292   # module default
    hidden_dim = 64    # module default

    key = jax.random.PRNGKey(0)
    kx, kp = jax.random.split(key)
    x = jax.random.normal(kx, (batch, input_dim), jnp.float32)
    w1, b1, w2, b2 = init_params(kp, input_dim, hidden_dim)

    out = cnn_classifier_forward(x, w1, b1, w2, b2)
    out = jax.block_until_ready(out)
    assert out.shape == (batch, 2)

    # Reference with matching bf16 rounding of the fc1 operands (f32 accumulate).
    x_bf = x.astype(jnp.bfloat16).astype(jnp.float32)
    w1_bf = w1.astype(jnp.bfloat16).astype(jnp.float32)
    ref_bf = jnp.maximum(x_bf @ w1_bf + b1, 0.0) @ w2 + b2
    assert jnp.allclose(out, ref_bf, atol=5e-3, rtol=5e-3)

    # Looser check against the pure-f32 PyTorch-semantic reference.
    ref_f32 = jnp.maximum(x @ w1 + b1, 0.0) @ w2 + b2
    assert jnp.allclose(out, ref_f32, atol=5e-2, rtol=5e-2)

    print("KERNEL_OK")
</pallas_src>

<mosaic_0001>
module attributes {stable_mosaic.version = 11 : i64} {
  func.func @mlp_kernel(%arg0: memref<8x1408xbf16, #tpu.memory_space<vmem>>, %arg1: memref<1408x128xbf16, #tpu.memory_space<vmem>>, %arg2: memref<1x128xf32, #tpu.memory_space<vmem>>, %arg3: memref<128x128xf32, #tpu.memory_space<vmem>>, %arg4: memref<1x128xf32, #tpu.memory_space<vmem>>, %arg5: memref<8x128xf32, #tpu.memory_space<vmem>>) attributes {dimension_semantics = [], scalar_prefetch = 0 : i64, scratch_operands = 0 : i64, tpu.core_type = #tpu.core_type<tc>} {
    %c0 = arith.constant 0 : index
    %c0_0 = arith.constant 0 : index
    %0 = vector.load %arg0[%c0, %c0_0] : memref<8x1408xbf16, #tpu.memory_space<vmem>>, vector<8x1408xbf16>
    %c0_1 = arith.constant 0 : index
    %c0_2 = arith.constant 0 : index
    %1 = vector.load %arg1[%c0_1, %c0_2] : memref<1408x128xbf16, #tpu.memory_space<vmem>>, vector<1408x128xbf16>
    %cst = arith.constant dense<0.000000e+00> : vector<8x128xf32>
    %2 = tpu.matmul %0, %1, %cst {dimension_numbers = #tpu.dot_dimension_numbers<[1], [0], [0], [1], [0, 0, 1, 1], [], []>} : vector<8x1408xbf16>, vector<1408x128xbf16>, vector<8x128xf32> -> vector<8x128xf32>
    %c0_3 = arith.constant 0 : index
    %c0_4 = arith.constant 0 : index
    %3 = vector.load %arg2[%c0_3, %c0_4] : memref<1x128xf32, #tpu.memory_space<vmem>>, vector<1x128xf32>
    %4 = vector.broadcast %3 : vector<1x128xf32> to vector<8x128xf32>
    %5 = arith.addf %2, %4 : vector<8x128xf32>
    %cst_5 = arith.constant 0.000000e+00 : f32
    %6 = vector.broadcast %cst_5 : f32 to vector<8x128xf32>
    %7 = arith.maximumf %5, %6 : vector<8x128xf32>
    %c0_6 = arith.constant 0 : index
    %c0_7 = arith.constant 0 : index
    %8 = vector.load %arg3[%c0_6, %c0_7] : memref<128x128xf32, #tpu.memory_space<vmem>>, vector<128x128xf32>
    %cst_8 = arith.constant dense<0.000000e+00> : vector<8x128xf32>
    %9 = tpu.matmul %7, %8, %cst_8 {dimension_numbers = #tpu.dot_dimension_numbers<[1], [0], [0], [1], [0, 0, 1, 1], [], []>} : vector<8x128xf32>, vector<128x128xf32>, vector<8x128xf32> -> vector<8x128xf32>
    %c0_9 = arith.constant 0 : index
    %c0_10 = arith.constant 0 : index
    %10 = vector.load %arg4[%c0_9, %c0_10] : memref<1x128xf32, #tpu.memory_space<vmem>>, vector<1x128xf32>
    %11 = vector.broadcast %10 : vector<1x128xf32> to vector<8x128xf32>
    %12 = arith.addf %9, %11 : vector<8x128xf32>
    %c0_11 = arith.constant 0 : index
    %c0_12 = arith.constant 0 : index
    %13 = vector.load %arg5[%c0_11, %c0_12] : memref<8x128xf32, #tpu.memory_space<vmem>>, vector<8x128xf32>
    tpu.vector_store %arg5[%c0_11, %c0_12], %12 {strides = array<i32>} : memref<8x128xf32, #tpu.memory_space<vmem>>, vector<8x128xf32>,
    return
  }
}

</mosaic_0001>

<bundles_post_ra>
// kernel: tpu_custom_call.1
= control target key start
LH: loop header
LB: loop body
LE: loop exit
PB: predicated region body
PF: predicated region fallthrough
CT: control target
= control target key end

     0   :  { %10 = vsyncpa [#allocation3], 0  ;;  %s1795_s0 = inlined_call_operand.hbm [shape: bf16[8,1408], index: 0, kind: input, shape index: {}]   ;;  %s1796_s1 = inlined_call_operand.hbm [shape: bf16[1408,128], index: 1, kind: input, shape index: {}]   ;;  %s1797_s2 = inlined_call_operand.vmem [shape: f32[1,128], index: 2, kind: input, shape index: {}]   ;;  %s1798_s3 = inlined_call_operand.hbm [shape: f32[128,128], index: 3, kind: input, shape index: {}]   ;;  %s1799_s4 = inlined_call_operand.vmem [shape: f32[1,128], index: 4, kind: input, shape index: {}]   ;;  %s1800_s5 = inlined_call_operand.hbm [shape: f32[8,128], index: 5, kind: output, shape index: {}]  }
   0x1   :  { %11 = vsyncpa [#allocation6], 0 }
   0x2   :  { %12 = vsyncpa [#allocation4], 0  ;;  %s1688_s18 = smov [#allocation5]   ;;  %s1594_s22 = scalar_lea.hbm %s1796_s1, 11264 }
   0x3   :  { %s28_s19 = sshll.u32 %s1688_s18, 4  ;;  %p1595_p0 = scmp.ne.s32.totalorder %s1796_s1, %s1594_s22  ;;  %s29_s19 = int_to_ptr.vmem [resolvable:$true] %s28_s19 }
   0x4   :  { %p1598_p1 = scmp.lt.u32.totalorder %s1594_s22, %s1796_s1 }
   0x6   :  { %p1600_p2 = pnand %p1598_p1, %p1595_p0 }
   0x8   :  { %1603 = shalt.err (!%p1600_p2)
}
   0x9   :  { %s1604_s27 = scalar_lea.vmem %s29_s19, 11264  ;;  %p1609_p4 = scmp.lt.s32.totalorder %s29_s19, %s29_s19 }
   0xa   :  { %p1605_p3 = scmp.ne.s32.totalorder %s29_s19, %s1604_s27  ;;  %p1610_p5 = scmp.lt.s32.totalorder %s1604_s27, %s1604_s27 }
   0xc   :  { %p1611_p6 = por %p1610_p5, %p1609_p4 }
   0xe   :  { %p1612_p7 = pnand %p1611_p6, %p1605_p3 }
  0x10   :  { %1615 = shalt.err (!%p1612_p7)
}
  0x11   :  { %s1689_s28 = smov 64   ;;  %s1690_s29 = smov 4  }
  0x12   :  { %34 = dma.hbm_to_vmem [thread:$0]  %s1796_s1, 11264, %s29_s19, [#allocation6], %s1689_s28, %s1689_s28, %s1690_s29  }
  0x13   :  { %s1691_s7 = smov [#allocation2]   ;;  %s1692_s9 = smov [#allocation7]  }
  0x14   :  { %s19_s8 = sshll.u32 %s1691_s7, 4  ;;  %s42_s10 = sshll.u32 %s1692_s9, 4  ;;  %s20_s8 = int_to_ptr.vmem [resolvable:$true] %s19_s8  ;;  %s43_s10 = int_to_ptr.vmem [resolvable:$true] %s42_s10 }
  0x15   :  { %s1616_s13 = scalar_lea.hbm %s1795_s0, 704 }
  0x16   :  { %p1617_p8 = scmp.ne.s32.totalorder %s1795_s0, %s1616_s13  ;;  %p1620_p9 = scmp.lt.u32.totalorder %s1616_s13, %s1795_s0 }
  0x18   :  { %p1622_p10 = pnand %p1620_p9, %p1617_p8 }
  0x1a   :  { %1625 = shalt.err (!%p1622_p10)
}
  0x1b   :  { %s1626_s1 = scalar_lea.vmem %s20_s8, 704  ;;  %p1631_p12 = scmp.lt.s32.totalorder %s20_s8, %s20_s8 }
  0x1c   :  { %p1627_p11 = scmp.ne.s32.totalorder %s20_s8, %s1626_s1  ;;  %p1632_p13 = scmp.lt.s32.totalorder %s1626_s1, %s1626_s1 }
  0x1e   :  { %p1633_p0 = por %p1632_p13, %p1631_p12 }
  0x20   :  { %p1634_p1 = pnand %p1633_p0, %p1627_p11 }
  0x22   :  { %1637 = shalt.err (!%p1634_p1)
}
  0x23   :  { %22 = dma.hbm_to_vmem [thread:$0]  %s1795_s0, 704, %s20_s8, [#allocation3]  }
  0x24   :  { %s1638_s22 = scalar_lea.hbm %s1798_s3, 2048 }
  0x25   :  { %p1639_p2 = scmp.ne.s32.totalorder %s1798_s3, %s1638_s22  ;;  %p1642_p3 = scmp.lt.u32.totalorder %s1638_s22, %s1798_s3 }
  0x27   :  { %p1644_p4 = pnand %p1642_p3, %p1639_p2 }
  0x29   :  { %1647 = shalt.err (!%p1644_p4)
}
  0x2a   :  { %s1648_s27 = scalar_lea.vmem %s43_s10, 2048  ;;  %p1653_p6 = scmp.lt.s32.totalorder %s43_s10, %s43_s10 }
  0x2b   :  { %p1649_p5 = scmp.ne.s32.totalorder %s43_s10, %s1648_s27  ;;  %p1654_p7 = scmp.lt.s32.totalorder %s1648_s27, %s1648_s27 }
  0x2d   :  { %p1655_p8 = por %p1654_p7, %p1653_p6 }
  0x2f   :  { %p1656_p9 = pnand %p1655_p8, %p1649_p5 }
  0x31   :  { %1659 = shalt.err (!%p1656_p9)
}
  0x32   :  { %s1693_s0 = smov 128   ;;  %s1694_s28 = smov 8  }
  0x33   :  { %48 = dma.hbm_to_vmem [thread:$0]  %s1798_s3, 2048, %s43_s10, [#allocation6], %s1693_s0, %s1693_s0, %s1694_s28  }
  0x34   :  { %1682 = dma.done.wait [#allocation3], 704  }
  0x35   :  { %1683 = vsyncadd [#allocation3], 4294966592 }
  0x36   :  { %1684 = dma.done.wait [#allocation6], 13312  }
  0x37   :  { %1685 = vsyncadd [#allocation6], 4294953984  ;;  %v1495_v0 = vld [vmem:[#allocation5 + $0x40] sm:$0xff]   ;;  %v1499_v4 = vld [vmem:[#allocation5 + $0x48] sm:$0xff]   ;;  %vm1696_vm0 = vmmov 0   ;;  %s1698_s8 = smov [#allocation8]  }
  0x38   :  { %v1496_v1 = vld [vmem:[#allocation5] sm:$0xff]   ;;  %1269 = vmatprep.subr.bf16.mxu0 %v1495_v0  ;;  %v1500_v5 = vld [vmem:[#allocation5 + $0x8] sm:$0xff]   ;;  %v1503_v8 = vld [vmem:[#allocation5 + $0x50] sm:$0xff]   ;;  %s1158_s9 = sshll.u32 %s1698_s8, 4  ;;  %s1159_s9 = int_to_ptr.vmem [resolvable:$true] %s1158_s9 }
  0x39   :  { %v1497_v2 = vld [vmem:[#allocation5 + $0xc0] sm:$0xff]   ;;  %1270 = vmatpush3.bf16.msra.mxu0 %v1496_v1  ;;  %v1501_v6 = vld [vmem:[#allocation5 + $0xc8] sm:$0xff]   ;;  %v1504_v9 = vld [vmem:[#allocation5 + $0x10] sm:$0xff]   ;;  %s1660_s10 = scalar_lea.vmem %s1159_s9, 128  ;;  %p1665_p11 = scmp.lt.s32.totalorder %s1159_s9, %s1159_s9 }
  0x3a   :  { %v1498_v3 = vld [vmem:[#allocation5 + $0x80] sm:$0xff]   ;;  %1291 = vmatprep.subr.bf16.mxu1 %v1497_v2  ;;  %1271 = vmatprep.subr.bf16.mxu0 %v1499_v4  ;;  %v1502_v7 = vld [vmem:[#allocation5 + $0x88] sm:$0xff]   ;;  %v1505_v10 = vld [vmem:[#allocation5 + $0xd0] sm:$0xff]   ;;  %p1661_p10 = scmp.ne.s32.totalorder %s1159_s9, %s1660_s10  ;;  %p1666_p12 = scmp.lt.s32.totalorder %s1660_s10, %s1660_s10 }
  0x3b   :  { %1292 = vmatpush3.bf16.msra.mxu1 %v1498_v3  ;;  %v1506_v11 = vld [vmem:[#allocation5 + $0x90] sm:$0xff]   ;;  %v1507_v12 = vld [vmem:[#allocation5 + $0x58] sm:$0xff]   ;;  %v1511_v16 = vld [vmem:[#allocation5 + $0x60] sm:$0xff]  }
  0x3c   :  { %1293 = vmatprep.subr.bf16.mxu1 %v1501_v6  ;;  %v1508_v13 = vld [vmem:[#allocation5 + $0x18] sm:$0xff]   ;;  %v1512_v17 = vld [vmem:[#allocation5 + $0x20] sm:$0xff]   ;;  %v1515_v20 = vld [vmem:[#allocation5 + $0x68] sm:$0xff]   ;;  %p1667_p13 = por %p1666_p12, %p1665_p11 }
  0x3d   :  { %1272 = vmatpush3.bf16.msra.mxu0 %v1500_v5  ;;  %v1509_v14 = vld [vmem:[#allocation5 + $0xd8] sm:$0xff]   ;;  %v1513_v18 = vld [vmem:[#allocation5 + $0xe0] sm:$0xff]   ;;  %v1516_v21 = vld [vmem:[#allocation5 + $0x28] sm:$0xff]  }
  0x3e   :  { %1273 = vmatprep.subr.bf16.mxu0 %v1503_v8  ;;  %v1510_v15 = vld [vmem:[#allocation5 + $0x98] sm:$0xff]   ;;  %v1514_v19 = vld [vmem:[#allocation5 + $0xa0] sm:$0xff]   ;;  %v1517_v22 = vld [vmem:[#allocation5 + $0xe8] sm:$0xff]   ;;  %p1668_p0 = pnand %p1667_p13, %p1661_p10 }
  0x3f   :  { %1294 = vmatpush3.bf16.msra.mxu1 %v1502_v7  ;;  %v1518_v23 = vld [vmem:[#allocation5 + $0xa8] sm:$0xff]   ;;  %v1519_v24 = vld [vmem:[#allocation5 + $0x70] sm:$0xff]   ;;  %v1523_v28 = vld [vmem:[#allocation5 + $0x78] sm:$0xff]  }
  0x40   :  { %1295 = vmatprep.subr.bf16.mxu1 %v1505_v10  ;;  %v1520_v25 = vld [vmem:[#allocation5 + $0x30] sm:$0xff]   ;;  %v1524_v29 = vld [vmem:[#allocation5 + $0x38] sm:$0xff]   ;;  %v1529_v35 = vld [vmem:[#allocation5 + $0x140] sm:$0xff]  }
  0x41   :  { %1274 = vmatpush3.bf16.msra.mxu0 %v1504_v9  ;;  %v1521_v26 = vld [vmem:[#allocation5 + $0xf0] sm:$0xff]   ;;  %v1525_v30 = vld [vmem:[#allocation5 + $0xf8] sm:$0xff]   ;;  %v1532_v39 = vld [vmem:[#allocation5 + $0x100] sm:$0xff]  }
  0x42   :  { %1275 = vmatprep.subr.bf16.mxu0 %v1507_v12  ;;  %v1522_v27 = vld [vmem:[#allocation5 + $0xb0] sm:$0xff]   ;;  %v1528_v34 = vld [vmem:[#allocation5 + $0xb8] sm:$0xff]   ;;  %v1533_v40 = vld [vmem:[#allocation5 + $0x1c0] sm:$0xff]  }
  0x43   :  { %1296 = vmatpush3.bf16.msra.mxu1 %v1506_v11  ;;  %v61_v31 = vld [vmem:[#allocation2] sm:$0xff]  ;;  %v62_v36 = vld [vmem:[#allocation2 + $0x8] sm:$0xff]  ;;  %v1535_v42 = vld [vmem:[#allocation5 + $0x148] sm:$0xff]  }
  0x44   :  { %1297 = vmatprep.subr.bf16.mxu1 %v1509_v14  ;;  %v1169_v32 = vcombine.low %v61_v31, %v61_v31  ;;  %v1170_v33 = vcombine.high %v61_v31, %v61_v31  ;;  %v1171_v37 = vcombine.low %v62_v36, %v62_v36  ;;  %v1172_v38 = vcombine.high %v62_v36, %v62_v36  ;;  %v1534_v41 = vld [vmem:[#allocation5 + $0x180] sm:$0xff]   ;;  %v1536_v43 = vld [vmem:[#allocation5 + $0x108] sm:$0xff]   ;;  %v1539_v46 = vld [vmem:[#allocation5 + $0x150] sm:$0xff]  }
  0x45   :  { %1276 = vmatpush3.bf16.msra.mxu0 %v1508_v13  ;;  %v1537_v44 = vld [vmem:[#allocation5 + $0x1c8] sm:$0xff]   ;;  %v1540_v47 = vld [vmem:[#allocation5 + $0x110] sm:$0xff]   ;;  %v1543_v50 = vld [vmem:[#allocation5 + $0x158] sm:$0xff]   ;;  %v1695_v14 = vmov 0.0  }
  0x46   :  { %1277 = vmatprep.subr.bf16.mxu0 %v1511_v16  ;;  %849 = vmatprep.mubr.bf16.mxu0 %v1170_v33  ;;  %v1538_v45 = vld [vmem:[#allocation5 + $0x188] sm:$0xff]   ;;  %v1541_v48 = vld [vmem:[#allocation5 + $0x1d0] sm:$0xff]   ;;  %v1544_v51 = vld [vmem:[#allocation5 + $0x118] sm:$0xff]  }
  0x47   :  { %1298 = vmatpush3.bf16.msra.mxu1 %v1510_v15  ;;  %889 = vmatprep.mubr.bf16.mxu1 %v1172_v38  ;;  %v1542_v49 = vld [vmem:[#allocation5 + $0x190] sm:$0xff]   ;;  %v1545_v52 = vld [vmem:[#allocation5 + $0x1d8] sm:$0xff]   ;;  %v1547_v54 = vld [vmem:[#allocation5 + $0x160] sm:$0xff]  }
  0x48   :  { %1299 = vmatprep.subr.bf16.mxu1 %v1513_v18  ;;  %v1546_v53 = vld [vmem:[#allocation5 + $0x198] sm:$0xff]   ;;  %v1548_v55 = vld [vmem:[#allocation5 + $0x120] sm:$0xff]   ;;  %v1551_v58 = vld [vmem:[#allocation5 + $0x168] sm:$0xff]  }
  0x49   :  { %1278 = vmatpush3.bf16.msra.mxu0 %v1512_v17  ;;  %v1549_v56 = vld [vmem:[#allocation5 + $0x1e0] sm:$0xff]   ;;  %v1552_v59 = vld [vmem:[#allocation5 + $0x128] sm:$0xff]   ;;  %v1555_v62 = vld [vmem:[#allocation5 + $0x170] sm:$0xff]  }
  0x4a   :  { %1279 = vmatprep.subr.bf16.mxu0 %v1515_v20  ;;  %v1550_v57 = vld [vmem:[#allocation5 + $0x1a0] sm:$0xff]   ;;  %v1553_v60 = vld [vmem:[#allocation5 + $0x1e8] sm:$0xff]   ;;  %v1556_v63 = vld [vmem:[#allocation5 + $0x130] sm:$0xff]  }
  0x4b   :  { %1300 = vmatpush3.bf16.msra.mxu1 %v1514_v19  ;;  %v1554_v61 = vld [vmem:[#allocation5 + $0x1a8] sm:$0xff]   ;;  %v1557_v0 = vld [vmem:[#allocation5 + $0x1f0] sm:$0xff]   ;;  %v1559_v2 = vld [vmem:[#allocation5 + $0x178] sm:$0xff]  }
  0x4c   :  { %1301 = vmatprep.subr.bf16.mxu1 %v1517_v22  ;;  %v1558_v1 = vld [vmem:[#allocation5 + $0x1b0] sm:$0xff]   ;;  %v1560_v3 = vld [vmem:[#allocation5 + $0x138] sm:$0xff]   ;;  %v63_v5 = vld [vmem:[#allocation2 + $0x10] sm:$0xff] }
  0x4d   :  { %1280 = vmatpush3.bf16.msra.mxu0 %v1516_v21  ;;  %v1561_v4 = vld [vmem:[#allocation5 + $0x1f8] sm:$0xff]   ;;  %v1173_v6 = vcombine.low %v63_v5, %v63_v5  ;;  %v1174_v7 = vcombine.high %v63_v5, %v63_v5  ;;  %v1565_v9 = vld [vmem:[#allocation5 + $0x240] sm:$0xff]   ;;  %v64_v10 = vld [vmem:[#allocation2 + $0x18] sm:$0xff] }
  0x4e   :  { %1281 = vmatprep.subr.bf16.mxu0 %v1519_v24  ;;  %v1564_v8 = vld [vmem:[#allocation5 + $0x1b8] sm:$0xff]   ;;  %v1175_v11 = vcombine.low %v64_v10, %v64_v10  ;;  %v1176_v12 = vcombine.high %v64_v10, %v64_v10  ;;  %v1568_v13 = vld [vmem:[#allocation5 + $0x200] sm:$0xff]   ;;  %v1570_v16 = vld [vmem:[#allocation5 + $0x248] sm:$0xff]  }
  0x4f   :  { %1302 = vmatpush3.bf16.msra.mxu1 %v1518_v23  ;;  %v1569_v15 = vld [vmem:[#allocation5 + $0x280] sm:$0xff]   ;;  %v1571_v17 = vld [vmem:[#allocation5 + $0x208] sm:$0xff]   ;;  %v1573_v19 = vld [vmem:[#allocation5 + $0x250] sm:$0xff]  }
  0x50   :  { %1303 = vmatprep.subr.bf16.mxu1 %v1521_v26  ;;  %v1572_v18 = vld [vmem:[#allocation5 + $0x288] sm:$0xff]   ;;  %v1574_v20 = vld [vmem:[#allocation5 + $0x210] sm:$0xff]   ;;  %v1576_v22 = vld [vmem:[#allocation5 + $0x258] sm:$0xff]  }
  0x51   :  { %1282 = vmatpush3.bf16.msra.mxu0 %v1520_v25  ;;  %v1575_v21 = vld [vmem:[#allocation5 + $0x290] sm:$0xff]   ;;  %v1577_v23 = vld [vmem:[#allocation5 + $0x218] sm:$0xff]   ;;  %v1579_v24 = vld [vmem:[#allocation5 + $0x260] sm:$0xff]  }
  0x52   :  { %1283 = vmatprep.subr.bf16.mxu0 %v1523_v28  ;;  %v1578_v25 = vld [vmem:[#allocation5 + $0x298] sm:$0xff]   ;;  %v1580_v26 = vld [vmem:[#allocation5 + $0x220] sm:$0xff]   ;;  %v1584_v31 = vld [vmem:[#allocation5 + $0x2a8] sm:$0xff]  }
  0x53   :  { %1304 = vmatpush3.bf16.msra.mxu1 %v1522_v27  ;;  %v1582_v27 = vld [vmem:[#allocation5 + $0x268] sm:$0xff]   ;;  %v1581_v28 = vld [vmem:[#allocation5 + $0x2a0] sm:$0xff]   ;;  %v1586_v33 = vld [vmem:[#allocation5 + $0x230] sm:$0xff]  }
  0x54   :  { %1305 = vmatprep.subr.bf16.mxu1 %v1525_v30  ;;  %v1585_v30 = vld [vmem:[#allocation5 + $0x270] sm:$0xff]   ;;  %v1592_v38 = vld [vmem:[#allocation5 + $0x2b8] sm:$0xff]  }
  0x55   :  { %1284 = vmatpush3.bf16.msra.mxu0 %v1524_v29  ;;  %v1583_v29 = vld [vmem:[#allocation5 + $0x228] sm:$0xff]   ;;  %v1587_v36 = vld [vmem:[#allocation5 + $0x2b0] sm:$0xff]  }
  0x56   :  { %1313 = vmatprep.subr.bf16.mxu0 %v1529_v35  ;;  %v1588_v35 = vld [vmem:[#allocation5 + $0x278] sm:$0xff]  }
  0x57   :  { %1306 = vmatpush3.bf16.msra.mxu1 %v1528_v34 }
  0x58   :  { %850 = vmatmul.mubr.bf16.vlgmr.msra.gmra.mrb[0].mxu0 %v1169_v32  ;;  %1335 = vmatprep.subr.bf16.mxu1 %v1533_v40  ;;  %v65_v32 = vld [vmem:[#allocation2 + $0x20] sm:$0xff]  ;;  %v1593_v40 = vld [vmem:[#allocation2 + $0x28] ss:$0 sps:$4 sm:$0xff]  }
  0x59   :  { %1314 = vmatpush3.bf16.msra.mxu0 %v1532_v39  ;;  %929 = vmatprep.mubr.bf16.mxu0 %v1174_v7  ;;  %v1178_v34 = vcombine.high %v65_v32, %v65_v32  ;;  %v1177_v39 = vcombine.low %v65_v32, %v65_v32 }
  0x5a   :  { %890 = vmatmul.mubr.bf16.vlgmr.msra.gmra.mrb[0].mxu1 %v1171_v37  ;;  %1315 = vmatprep.subr.bf16.mxu0 %v1535_v42  ;;  %v1589_v37 = vld [vmem:[#allocation5 + $0x238] sm:$0xff]   ;;  %v1059_v42 = vld [vmem:[#allocation7 + $0x8] sm:$0xff] }
  0x5b   :  { %1336 = vmatpush3.bf16.msra.mxu1 %v1534_v41  ;;  %969 = vmatprep.mubr.bf16.mxu1 %v1176_v12  ;;  %v1058_v41 = vld [vmem:[#allocation7] sm:$0xff] }
  0x5c   :  { %1337 = vmatprep.subr.bf16.mxu1 %v1537_v44  ;;  %v1697_v44 = vmov 0.0|0.0  }
  0x5d   :  { %1316 = vmatpush3.bf16.msra.mxu0 %v1536_v43  ;;  %v1060_v43 = vld [vmem:[#allocation7 + $0x10] sm:$0xff] }
  0x5e   :  { %1317 = vmatprep.subr.bf16.mxu0 %v1539_v46  ;;  %v1061_v46 = vld [vmem:[#allocation7 + $0x18] sm:$0xff] }
  0x5f   :  { %1338 = vmatpush3.bf16.msra.mxu1 %v1538_v45  ;;  %v1461_v45 = vpack.c.bf16 %v1059_v42, %v1058_v41 }
  0x60   :  { %1339 = vmatprep.subr.bf16.mxu1 %v1541_v48  ;;  %v1062_v48 = vld [vmem:[#allocation7 + $0x20] sm:$0xff] }
  0x61   :  { %1318 = vmatpush3.bf16.msra.mxu0 %v1540_v47  ;;  %v1464_v47 = vpack.c.bf16 %v1061_v46, %v1060_v43 }
  0x62   :  { %1319 = vmatprep.subr.bf16.mxu0 %v1543_v50 }
  0x63   :  { %1340 = vmatpush3.bf16.msra.mxu1 %v1542_v49  ;;  %v1063_v49 = vld [vmem:[#allocation7 + $0x28] sm:$0xff] }
  0x64   :  { %1341 = vmatprep.subr.bf16.mxu1 %v1545_v52  ;;  %v1467_v50 = vpack.c.bf16 %v1063_v49, %v1062_v48  ;;  %v1065_v52 = vld [vmem:[#allocation7 + $0x38] sm:$0xff] }
  0x65   :  { %1320 = vmatpush3.bf16.msra.mxu0 %v1544_v51  ;;  %v1064_v51 = vld [vmem:[#allocation7 + $0x30] sm:$0xff] }
  0x66   :  { %1321 = vmatprep.subr.bf16.mxu0 %v1547_v54  ;;  %v1066_v54 = vld [vmem:[#allocation7 + $0x40] sm:$0xff] }
  0x67   :  { %1342 = vmatpush3.bf16.msra.mxu1 %v1546_v53  ;;  %v1470_v53 = vpack.c.bf16 %v1065_v52, %v1064_v51 }
  0x68   :  { %1343 = vmatprep.subr.bf16.mxu1 %v1549_v56 }
  0x69   :  { %1322 = vmatpush3.bf16.msra.mxu0 %v1548_v55  ;;  %v1067_v55 = vld [vmem:[#allocation7 + $0x48] sm:$0xff] }
  0x6a   :  { %1323 = vmatprep.subr.bf16.mxu0 %v1551_v58  ;;  %v1473_v56 = vpack.c.bf16 %v1067_v55, %v1066_v54  ;;  %v1069_v58 = vld [vmem:[#allocation7 + $0x58] sm:$0xff] }
  0x6b   :  { %1344 = vmatpush3.bf16.msra.mxu1 %v1550_v57  ;;  %v1068_v57 = vld [vmem:[#allocation7 + $0x50] sm:$0xff] }
  0x6c   :  { %1345 = vmatprep.subr.bf16.mxu1 %v1553_v60  ;;  %v1070_v60 = vld [vmem:[#allocation7 + $0x60] sm:$0xff] }
  0x6d   :  { %1324 = vmatpush3.bf16.msra.mxu0 %v1552_v59  ;;  %v1476_v59 = vpack.c.bf16 %v1069_v58, %v1068_v57 }
  0x6e   :  { %1325 = vmatprep.subr.bf16.mxu0 %v1555_v62 }
  0x6f   :  { %1346 = vmatpush3.bf16.msra.mxu1 %v1554_v61  ;;  %v1071_v61 = vld [vmem:[#allocation7 + $0x68] sm:$0xff] }
  0x70   :  { %1347 = vmatprep.subr.bf16.mxu1 %v1557_v0  ;;  %v1479_v62 = vpack.c.bf16 %v1071_v61, %v1070_v60  ;;  %v1073_v0 = vld [vmem:[#allocation7 + $0x78] sm:$0xff] }
  0x71   :  { %1326 = vmatpush3.bf16.msra.mxu0 %v1556_v63  ;;  %v1072_v63 = vld [vmem:[#allocation7 + $0x70] sm:$0xff] }
  0x72   :  { %1327 = vmatprep.subr.bf16.mxu0 %v1559_v2 }
  0x73   :  { %1348 = vmatpush3.bf16.msra.mxu1 %v1558_v1  ;;  %v1482_v1 = vpack.c.bf16 %v1073_v0, %v1072_v63 }
  0x74   :  { %1349 = vmatprep.subr.bf16.mxu1 %v1561_v4 }
  0x75   :  { %1328 = vmatpush3.bf16.msra.mxu0 %v1560_v3  ;;  %v1168_v3 = vld [vmem:[%s1797_s2] ss:$0 sm:$0xff] }
  0x76   :  { %1357 = vmatprep.subr.bf16.mxu0 %v1565_v9 }
  0x77   :  { %1350 = vmatpush3.bf16.msra.mxu1 %v1564_v8 }
  0x78   :  { %930 = vmatmul.mubr.bf16.vlgmr.msra.gmra.mrb[4].mxu0 %v1173_v6  ;;  %1405 = vmatprep.subr.bf16.mxu1 %v1695_v14 }
  0x79   :  { %1358 = vmatpush3.bf16.msra.mxu0 %v1568_v13  ;;  %1009 = vmatprep.mubr.bf16.mxu0 %v1178_v34 }
  0x7a   :  { %970 = vmatmul.mubr.bf16.vlgmr.msra.gmra.mrb[4].mxu1 %v1175_v11  ;;  %1359 = vmatprep.subr.bf16.mxu0 %v1570_v16 }
  0x7b   :  { %1406 = vmatpush3.bf16.msra.mxu1 %v1569_v15  ;;  %1421 = vmatprep.mubr.msk.bf16.mxu1 %vm1696_vm0, %v1695_v14 }
  0x7c   :  { %1407 = vmatprep.subr.bf16.mxu1 %v1695_v14 }
  0x7d   :  { %1360 = vmatpush3.bf16.msra.mxu0 %v1571_v17 }
  0x7e   :  { %1361 = vmatprep.subr.bf16.mxu0 %v1573_v19 }
  0x7f   :  { %1408 = vmatpush3.bf16.msra.mxu1 %v1572_v18 }
  0x80   :  { %1409 = vmatprep.subr.bf16.mxu1 %v1695_v14 }
  0x81   :  { %1362 = vmatpush3.bf16.msra.mxu0 %v1574_v20 }
  0x82   :  { %1363 = vmatprep.subr.bf16.mxu0 %v1576_v22 }
  0x83   :  { %1410 = vmatpush3.bf16.msra.mxu1 %v1575_v21 }
  0x84   :  { %1411 = vmatprep.subr.bf16.mxu1 %v1695_v14 }
  0x85   :  { %1364 = vmatpush3.bf16.msra.mxu0 %v1577_v23 }
  0x86   :  { %1365 = vmatprep.subr.bf16.mxu0 %v1579_v24 }
  0x87   :  { %1412 = vmatpush3.bf16.msra.mxu1 %v1578_v25 }
  0x88   :  { %1413 = vmatprep.subr.bf16.mxu1 %v1695_v14 }
  0x89   :  { %1366 = vmatpush3.bf16.msra.mxu0 %v1580_v26 }
  0x8a   :  { %1367 = vmatprep.subr.bf16.mxu0 %v1582_v27 }
  0x8b   :  { %1414 = vmatpush3.bf16.msra.mxu1 %v1581_v28 }
  0x8c   :  { %1415 = vmatprep.subr.bf16.mxu1 %v1695_v14 }
  0x8d   :  { %1368 = vmatpush3.bf16.msra.mxu0 %v1583_v29 }
  0x8e   :  { %1369 = vmatprep.subr.bf16.mxu0 %v1585_v30 }
  0x8f   :  { %1416 = vmatpush3.bf16.msra.mxu1 %v1584_v31 }
  0x90   :  { %1417 = vmatprep.subr.bf16.mxu1 %v1695_v14 }
  0x91   :  { %1370 = vmatpush3.bf16.msra.mxu0 %v1586_v33 }
  0x92   :  { %1371 = vmatprep.subr.bf16.mxu0 %v1588_v35 }
  0x93   :  { %1418 = vmatpush3.bf16.msra.mxu1 %v1587_v36 }
  0x94   :  { %1419 = vmatprep.subr.bf16.mxu1 %v1695_v14 }
  0x95   :  { %1372 = vmatpush3.bf16.msra.mxu0 %v1589_v37 }
  0x96   :  { %1460 = vmatprep.subr.bf16.mxu0 %v1697_v44 }
  0x97   :  { %1420 = vmatpush3.bf16.msra.mxu1 %v1592_v38 }
  0x98   :  { %1010 = vmatmul.mubr.bf16.vlgmr.msra.gmra.mrb[8].mxu0 %v1177_v39  ;;  %v1268_v39 = vld [vmem:[%s1799_s4] ss:$0 sm:$0xff] }
  0x99   :  { %1457 = vmatprep.mubr.msk.f32.mxu0 %vm1696_vm0, %v1695_v14  ;;  %1462 = vmatpush3.bf16.msra.mxu0 %v1461_v45 }
  0x9a   :  { %1422 = vmatmul.mubr.bf16.vlgmr.msra.gmra.mrb[8].mxu1 %v1593_v40  ;;  %1463 = vmatprep.subr.bf16.mxu0 %v1697_v44 }
  0x9d   :  { %1465 = vmatpush3.bf16.msra.mxu0 %v1464_v47 }
  0x9e   :  { %1466 = vmatprep.subr.bf16.mxu0 %v1697_v44 }
  0xa1   :  { %1468 = vmatpush3.bf16.msra.mxu0 %v1467_v50 }
  0xa2   :  { %1469 = vmatprep.subr.bf16.mxu0 %v1697_v44 }
  0xa5   :  { %1471 = vmatpush3.bf16.msra.mxu0 %v1470_v53 }
  0xa6   :  { %1472 = vmatprep.subr.bf16.mxu0 %v1697_v44 }
  0xa9   :  { %1474 = vmatpush3.bf16.msra.mxu0 %v1473_v56 }
  0xaa   :  { %1475 = vmatprep.subr.bf16.mxu0 %v1697_v44 }
  0xad   :  { %1477 = vmatpush3.bf16.msra.mxu0 %v1476_v59 }
  0xae   :  { %1478 = vmatprep.subr.bf16.mxu0 %v1697_v44 }
  0xb1   :  { %1480 = vmatpush3.bf16.msra.mxu0 %v1479_v62 }
  0xb2   :  { %1481 = vmatprep.subr.bf16.mxu0 %v1697_v44 }
  0xb5   :  { %1483 = vmatpush3.bf16.msra.mxu0 %v1482_v1 }
 0x12b   :  { %v1285_v2 = vpop.f32.mrb[0].mxu0 }
 0x12c   :  { %v1286_v4 = vpop.f32.mrb[1].mxu0 }
 0x12d   :  { %v1287_v5 = vadd.f32 %v1286_v4, %v1285_v2  ;;  %v1288_v6 = vpop.f32.mrb[2].mxu0  ;;  %v1307_v7 = vpop.f32.mrb[0].mxu1 }
 0x12e   :  { %v1289_v8 = vpop.f32.mrb[3].mxu0  ;;  %v1308_v9 = vpop.f32.mrb[1].mxu1 }
 0x12f   :  { %v852_v10 = vadd.f32 %v1287_v5, %v1168_v3  ;;  %v1309_v11 = vadd.f32 %v1308_v9, %v1307_v7  ;;  %v1310_v12 = vpop.f32.mrb[2].mxu1 }
 0x130   :  { %v1311_v13 = vpop.f32.mrb[3].mxu1 }
 0x131   :  { %v892_v14 = vadd.f32 %v1309_v11, %v852_v10 }
 0x14b   :  { %v1329_v15 = vpop.f32.mrb[4].mxu0 }
 0x14c   :  { %v1330_v16 = vpop.f32.mrb[5].mxu0 }
 0x14d   :  { %v1331_v17 = vadd.f32 %v1330_v16, %v1329_v15  ;;  %v1332_v18 = vpop.f32.mrb[6].mxu0  ;;  %v1351_v19 = vpop.f32.mrb[4].mxu1 }
 0x14e   :  { %v1333_v20 = vpop.f32.mrb[7].mxu0  ;;  %v1352_v22 = vpop.f32.mrb[5].mxu1 }
 0x14f   :  { %v932_v21 = vadd.f32 %v1331_v17, %v892_v14  ;;  %v1353_v23 = vadd.f32 %v1352_v22, %v1351_v19  ;;  %v1354_v24 = vpop.f32.mrb[6].mxu1 }
 0x150   :  { %v1355_v25 = vpop.f32.mrb[7].mxu1 }
 0x151   :  { %v972_v26 = vadd.f32 %v1353_v23, %v932_v21 }
 0x16b   :  { %v1373_v27 = vpop.f32.mrb[8].mxu0 }
 0x16c   :  { %v1374_v28 = vpop.f32.mrb[9].mxu0 }
 0x16d   :  { %v1375_v29 = vadd.f32 %v1374_v28, %v1373_v27  ;;  %v1376_v30 = vpop.f32.mrb[10].mxu0  ;;  %v1051_v31 = vpop.f32.mrb[8].mxu1 }
 0x16e   :  { %v1377_v32 = vpop.f32.mrb[11].mxu0  ;;  %v1423_v33 = vpop.f32.mrb[9].mxu1 }
 0x16f   :  { %v1012_v34 = vadd.f32 %v1375_v29, %v972_v26  ;;  %v1054_v35 = vpop.f32.mrb[10].mxu1 }
 0x170   :  { %v1424_v36 = vpop.f32.mrb[11].mxu1 }
 0x171   :  { %v1052_v37 = vadd.f32 %v1051_v31, %v1012_v34 }
 0x173   :  { %v1057_v38 = vmax.f32 %v1052_v37, 0.0 }
 0x175   :  { %1458 = vmatmul.mubr.f32.vlgmr.msra.gmra.mrb[12].mxu0 %v1057_v38 }
 0x248   :  { %v1147_v40 = vpop.f32.mrb[12].mxu0 }
 0x249   :  { %v1148_v41 = vadd.f32 %v1268_v39, %v1147_v40  ;;  %v1459_v42 = vpop.f32.mrb[13].mxu0 }
 0x24b   :  { %1151 = vst [vmem:[#allocation8] sm:$0xff] %v1148_v41 }
 0x24c   :  { %1671 = shalt.err (!%p1668_p0)
}
 0x24d   :  { %s1672_s13 = scalar_lea.hbm %s1800_s5, 128 }
 0x24e   :  { %p1673_p1 = scmp.ne.s32.totalorder %s1800_s5, %s1672_s13  ;;  %p1676_p2 = scmp.lt.u32.totalorder %s1672_s13, %s1800_s5 }
 0x250   :  { %p1678_p3 = pnand %p1676_p2, %p1673_p1 }
 0x252   :  { %1681 = shalt.err (!%p1678_p3)
}
 0x253   :  { %1161 = dma.vmem_to_hbm [thread:$0]  %s1159_s9, 128, %s1800_s5, [#allocation4]  }
 0x254   :  { %1686 = dma.done.wait [#allocation4], 128  }
 0x255   :  { %1687 = vsyncadd [#allocation4], 4294967168 }
 0x256   :  { %1165 = vsyncpa [#allocation3], 1 }
 0x257   :  { %1166 = vsyncpa [#allocation6], 1 }
 0x258   :  { %1167 = vsyncpa [#allocation4], 1 }

</bundles_post_ra>
